<compile_context>
chip_gen: v7x
topology: tpu7x:2x2x1
jax: 0.10.0
libtpu: 0.0.40
codegen_flags: <defaults>
</compile_context>

<pallas_src>
import functools

import jax
import jax.numpy as jnp
from jax.experimental import pallas as pl
from jax.experimental.pallas import tpu as pltpu


def _mlp_fused_kernel(*refs, num_layers: int):
    """refs = (x_ref, w0, b0, w1, b1, ..., w{L-1}, b{L-1}, o_ref)."""
    x_ref = refs[0]
    o_ref = refs[-1]
    wb_refs = refs[1:-1]

    # Keep the running activation in f32; MXU accumulates in f32 and the epilogue
    # (bias + ReLU) stays on the VPU in f32 (safe on v5e, which has no bf16 VPU).
    h = x_ref[...].astype(jnp.float32)
    for li in range(num_layers):
        w = wb_refs[2 * li][...].astype(jnp.float32)
        b = wb_refs[2 * li + 1][...].astype(jnp.float32)   # (1, Dout) -> broadcast
        y = b + jnp.dot(h, w, preferred_element_type=jnp.float32)
        if li != num_layers - 1:
            y = jnp.maximum(y, 0.0)                         # ReLU between hidden layers
        h = y
    o_ref[...] = h.astype(o_ref.dtype)


def _cost_estimate(batch, params, x, out_dtype_size):
    flops = 0
    bytes_accessed = x.size * x.dtype.itemsize
    for w, b in params:
        din, dout = w.shape
        flops += 2 * batch * din * dout
        bytes_accessed += w.size * w.dtype.itemsize + b.size * b.dtype.itemsize
    bytes_accessed += batch * params[-1][0].shape[1] * out_dtype_size
    return pl.CostEstimate(flops=flops, transcendentals=0,
                           bytes_accessed=bytes_accessed)


def mlp_without_norm(x, params, *, batch_tile=256):
    """Forward pass matching nn.Sequential(Linear, ReLU, ..., Linear) in one kernel."""
    B, Din = x.shape
    num_layers = len(params)
    Dout = params[-1][0].shape[1]

    flat_inputs = [x]
    for w, b in params:
        flat_inputs.append(w)
        flat_inputs.append(b.reshape(1, -1))

    kernel = functools.partial(_mlp_fused_kernel, num_layers=num_layers)
    out_shape = jax.ShapeDtypeStruct((B, Dout), x.dtype)
    cost = _cost_estimate(B, params, x, jnp.dtype(x.dtype).itemsize)

    # Keep the batch tile sublane-aligned (multiple of 8).
    bm = max(8, (int(batch_tile) // 8) * 8)

    if B <= bm:
        # No grid: single invocation, every operand is a full-array VMEM block.
        vmem = pl.BlockSpec(memory_space=pltpu.MemorySpace.VMEM)
        return pl.pallas_call(
            kernel,
            out_shape=out_shape,
            in_specs=[vmem] * len(flat_inputs),
            out_specs=vmem,
            cost_estimate=cost,
        )(*flat_inputs)

    # Large batch: tile rows, mark the batch axis "parallel" (megacore sharding on
    # v7x). Weights/biases map to block (0, 0) at every grid step, so they are DMA'd
    # once and stay VMEM-resident; only x rows / out rows stream.
    in_specs = [pl.BlockSpec((bm, Din), lambda i: (i, 0))]
    for w, _ in params:
        din, dout = w.shape
        in_specs.append(pl.BlockSpec((din, dout), lambda i: (0, 0)))
        in_specs.append(pl.BlockSpec((1, dout), lambda i: (0, 0)))
    # TODO(synk): for much larger layer widths (e.g. 4096x4096 on v7x's 64 MiB VMEM)
    # also tile the K/N dims of each layer and raise vmem_limit_bytes instead of
    # keeping full weights resident; likewise pad Dout to a lane-dense multiple of
    # 128 if masked partial stores ever show up as the bottleneck.
    return pl.pallas_call(
        kernel,
        out_shape=out_shape,
        grid=(pl.cdiv(B, bm),),
        in_specs=in_specs,
        out_specs=pl.BlockSpec((bm, Dout), lambda i: (i, 0)),
        compiler_params=pltpu.CompilerParams(
            dimension_semantics=("parallel",),
        ),
        cost_estimate=cost,
    )(*flat_inputs)


def init_mlp_params(key, input_size, hidden_sizes, output_size, dtype=jnp.float32):
    """Deterministic PyTorch-style (Kaiming-uniform-ish) init. Weights stored (in, out)."""
    sizes = [input_size] + list(hidden_sizes) + [output_size]
    params = []
    for i in range(len(sizes) - 1):
        fan_in, fan_out = sizes[i], sizes[i + 1]
        key, kw, kb = jax.random.split(key, 3)
        bound = 1.0 / (fan_in ** 0.5)
        w = jax.random.uniform(kw, (fan_in, fan_out), dtype, -bound, bound)
        b = jax.random.uniform(kb, (fan_out,), dtype, -bound, bound)
        params.append((w, b))
    return params


def mlp_reference(x, params):
    h = x
    n = len(params)
    for li, (w, b) in enumerate(params):
        h = h @ w + b
        if li != n - 1:
            h = jnp.maximum(h, 0.0)
    return h


if __name__ == "__main__":
    key = jax.random.PRNGKey(0)
    k_x, k_p, k_x2 = jax.random.split(key, 3)

    batch = 8
    input_size = 32
    hidden_sizes = (64, 48)
    output_size = 16

    x = jax.random.normal(k_x, (batch, input_size), jnp.float32)
    params = init_mlp_params(k_p, input_size, hidden_sizes, output_size)

    # Small-batch (no-grid, fully fused) path.
    out = mlp_without_norm(x, params)
    out = jax.block_until_ready(out)
    ref = mlp_reference(x, params)
    assert out.shape == (batch, output_size)
    assert jnp.allclose(out, ref, atol=1e-5, rtol=1e-5)

    # Batch-tiled ("parallel" grid) path, including a non-divisible batch.
    x_big = jax.random.normal(k_x2, (520, input_size), jnp.float32)
    out_big = mlp_without_norm(x_big, params, batch_tile=256)
    out_big = jax.block_until_ready(out_big)
    ref_big = mlp_reference(x_big, params)
    assert out_big.shape == (520, output_size)
    assert jnp.allclose(out_big, ref_big, atol=1e-5, rtol=1e-5)

    print("KERNEL_OK")
</pallas_src>

<mosaic_0001>
module attributes {stable_mosaic.version = 11 : i64} {
  func.func @_mlp_fused_kernel(%arg0: memref<8x32xf32, #tpu.memory_space<vmem>>, %arg1: memref<32x64xf32, #tpu.memory_space<vmem>>, %arg2: memref<1x64xf32, #tpu.memory_space<vmem>>, %arg3: memref<64x48xf32, #tpu.memory_space<vmem>>, %arg4: memref<1x48xf32, #tpu.memory_space<vmem>>, %arg5: memref<48x16xf32, #tpu.memory_space<vmem>>, %arg6: memref<1x16xf32, #tpu.memory_space<vmem>>, %arg7: memref<8x16xf32, #tpu.memory_space<vmem>>) attributes {dimension_semantics = [], scalar_prefetch = 0 : i64, scratch_operands = 0 : i64, tpu.core_type = #tpu.core_type<tc>} {
    %c0 = arith.constant 0 : index
    %c0_0 = arith.constant 0 : index
    %0 = vector.load %arg0[%c0, %c0_0] : memref<8x32xf32, #tpu.memory_space<vmem>>, vector<8x32xf32>
    %c0_1 = arith.constant 0 : index
    %c0_2 = arith.constant 0 : index
    %1 = vector.load %arg1[%c0_1, %c0_2] : memref<32x64xf32, #tpu.memory_space<vmem>>, vector<32x64xf32>
    %c0_3 = arith.constant 0 : index
    %c0_4 = arith.constant 0 : index
    %2 = vector.load %arg2[%c0_3, %c0_4] : memref<1x64xf32, #tpu.memory_space<vmem>>, vector<1x64xf32>
    %cst = arith.constant dense<0.000000e+00> : vector<8x64xf32>
    %3 = tpu.matmul %0, %1, %cst {dimension_numbers = #tpu.dot_dimension_numbers<[1], [0], [0], [1], [0, 0, 1, 1], [], []>} : vector<8x32xf32>, vector<32x64xf32>, vector<8x64xf32> -> vector<8x64xf32>
    %4 = vector.broadcast %2 : vector<1x64xf32> to vector<8x64xf32>
    %5 = arith.addf %4, %3 : vector<8x64xf32>
    %cst_5 = arith.constant 0.000000e+00 : f32
    %6 = vector.broadcast %cst_5 : f32 to vector<8x64xf32>
    %7 = arith.maximumf %5, %6 : vector<8x64xf32>
    %c0_6 = arith.constant 0 : index
    %c0_7 = arith.constant 0 : index
    %8 = vector.load %arg3[%c0_6, %c0_7] : memref<64x48xf32, #tpu.memory_space<vmem>>, vector<64x48xf32>
    %c0_8 = arith.constant 0 : index
    %c0_9 = arith.constant 0 : index
    %9 = vector.load %arg4[%c0_8, %c0_9] : memref<1x48xf32, #tpu.memory_space<vmem>>, vector<1x48xf32>
    %cst_10 = arith.constant dense<0.000000e+00> : vector<8x48xf32>
    %10 = tpu.matmul %7, %8, %cst_10 {dimension_numbers = #tpu.dot_dimension_numbers<[1], [0], [0], [1], [0, 0, 1, 1], [], []>} : vector<8x64xf32>, vector<64x48xf32>, vector<8x48xf32> -> vector<8x48xf32>
    %11 = vector.broadcast %9 : vector<1x48xf32> to vector<8x48xf32>
    %12 = arith.addf %11, %10 : vector<8x48xf32>
    %cst_11 = arith.constant 0.000000e+00 : f32
    %13 = vector.broadcast %cst_11 : f32 to vector<8x48xf32>
    %14 = arith.maximumf %12, %13 : vector<8x48xf32>
    %c0_12 = arith.constant 0 : index
    %c0_13 = arith.constant 0 : index
    %15 = vector.load %arg5[%c0_12, %c0_13] : memref<48x16xf32, #tpu.memory_space<vmem>>, vector<48x16xf32>
    %c0_14 = arith.constant 0 : index
    %c0_15 = arith.constant 0 : index
    %16 = vector.load %arg6[%c0_14, %c0_15] : memref<1x16xf32, #tpu.memory_space<vmem>>, vector<1x16xf32>
    %cst_16 = arith.constant dense<0.000000e+00> : vector<8x16xf32>
    %17 = tpu.matmul %14, %15, %cst_16 {dimension_numbers = #tpu.dot_dimension_numbers<[1], [0], [0], [1], [0, 0, 1, 1], [], []>} : vector<8x48xf32>, vector<48x16xf32>, vector<8x16xf32> -> vector<8x16xf32>
    %18 = vector.broadcast %16 : vector<1x16xf32> to vector<8x16xf32>
    %19 = arith.addf %18, %17 : vector<8x16xf32>
    %c0_17 = arith.constant 0 : index
    %c0_18 = arith.constant 0 : index
    %20 = vector.load %arg7[%c0_17, %c0_18] : memref<8x16xf32, #tpu.memory_space<vmem>>, vector<8x16xf32>
    tpu.vector_store %arg7[%c0_17, %c0_18], %19 {strides = array<i32>} : memref<8x16xf32, #tpu.memory_space<vmem>>, vector<8x16xf32>,
    return
  }
}

</mosaic_0001>

<bundles_post_ra>
// kernel: tpu_custom_call.1
= control target key start
LH: loop header
LB: loop body
LE: loop exit
PB: predicated region body
PF: predicated region fallthrough
CT: control target
= control target key end

     0   :  { %v437_v3 = vmov 0.0|0.0   ;;  %vm438_vm0 = vmmov 0   ;;  %v439_v6 = vmov 0.0   ;;  %s562_s0 = inlined_call_operand.vmem [shape: f32[8,32], index: 0, kind: input, shape index: {}]   ;;  %s563_s1 = inlined_call_operand.vmem [shape: f32[32,64], index: 1, kind: input, shape index: {}]   ;;  %s564_s2 = inlined_call_operand.vmem [shape: f32[1,64], index: 2, kind: input, shape index: {}]   ;;  %s565_s3 = inlined_call_operand.vmem [shape: f32[64,48], index: 3, kind: input, shape index: {}]   ;;  %s566_s4 = inlined_call_operand.vmem [shape: f32[1,48], index: 4, kind: input, shape index: {}]   ;;  %s567_s5 = inlined_call_operand.vmem [shape: f32[48,16], index: 5, kind: input, shape index: {}]   ;;  %s568_s6 = inlined_call_operand.vmem [shape: f32[1,16], index: 6, kind: input, shape index: {}]   ;;  %s569_s7 = inlined_call_operand.hbm [shape: f32[8,16], index: 7, kind: output, shape index: {}]  }
   0x1   :  { %v28_v0 = vld [vmem:[%s563_s1] sm:$0xff]  ;;  %v29_v1 = vld [vmem:[%s563_s1 + $0x8] sm:$0xff]  ;;  %v30_v2 = vld [vmem:[%s563_s1 + $0x10] sm:$0xff]  ;;  %382 = vmatprep.subr.bf16.mxu0 %v437_v3  ;;  %345 = vmatprep.mubr.msk.f32.mxu0 %vm438_vm0, %v439_v6 }
   0x2   :  { %v383_v4 = vpack.c.bf16 %v29_v1, %v28_v0  ;;  %v31_v5 = vld [vmem:[%s563_s1 + $0x18] sm:$0xff]  ;;  %v115_v7 = vld [vmem:[%s565_s3] sm:$0xff]  ;;  %388 = vmatprep.subr.bf16.mxu1 %v437_v3  ;;  %v116_v8 = vld [vmem:[%s565_s3 + $0x8] sm:$0xff]  ;;  %364 = vmatprep.mubr.msk.f32.mxu1 %vm438_vm0, %v439_v6 }
   0x3   :  { %v117_v9 = vld [vmem:[%s565_s3 + $0x10] sm:$0xff]  ;;  %v118_v10 = vld [vmem:[%s565_s3 + $0x18] sm:$0xff]  ;;  %v386_v11 = vpack.c.bf16 %v31_v5, %v30_v2  ;;  %v389_v12 = vpack.c.bf16 %v116_v8, %v115_v7 }
   0x4   :  { %384 = vmatpush3.bf16.msra.mxu0 %v383_v4 }
   0x5   :  { %385 = vmatprep.subr.bf16.mxu0 %v437_v3 }
   0x6   :  { %12 = vsyncpa [#allocation3], 0  ;;  %390 = vmatpush3.bf16.msra.mxu1 %v389_v12  ;;  %v392_v13 = vpack.c.bf16 %v118_v10, %v117_v9  ;;  %v119_v14 = vld [vmem:[%s565_s3 + $0x20] sm:$0xff]  ;;  %v120_v15 = vld [vmem:[%s565_s3 + $0x28] sm:$0xff]  ;;  %vm33_vm1 = vcmask 261120   ;;  %vm124_vm2 = vcmask 523264  }
   0x7   :  { %391 = vmatprep.subr.bf16.mxu1 %v437_v3  ;;  %v27_v16 = vld [vmem:[%s562_s0] sm:$0xff]  ;;  %v395_v17 = vpack.c.bf16 %v120_v15, %v119_v14  ;;  %v121_v18 = vld [vmem:[%s565_s3 + $0x30] sm:$0xff]  ;;  %v122_v19 = vld [vmem:[%s565_s3 + $0x38] sm:$0xff]  ;;  %vm213_vm3 = vcmask 392192   ;;  %s440_s17 = smov [#allocation2]   ;;  %vm294_vm4 = vcmask 130048  }
   0x8   :  { %387 = vmatpush3.bf16.msra.mxu0 %v386_v11  ;;  %v398_v20 = vpack.c.bf16 %v122_v19, %v121_v18  ;;  %v206_v21 = vld [vmem:[%s567_s5] sm:$0xff]  ;;  %v207_v22 = vld [vmem:[%s567_s5 + $0x8] sm:$0xff]  ;;  %v208_v23 = vld [vmem:[%s567_s5 + $0x10] sm:$0xff]  ;;  %s302_s18 = sshll.u32 %s440_s17, 4  ;;  %s303_s18 = int_to_ptr.vmem [resolvable:$true] %s302_s18 }
   0x9   :  { %400 = vmatprep.subr.bf16.mxu0 %v437_v3  ;;  %v401_v24 = vpack.c.bf16 %v207_v22, %v206_v21  ;;  %v209_v25 = vld [vmem:[%s567_s5 + $0x18] sm:$0xff]  ;;  %v311_v27 = vld [vmem:[%s564_s2] ss:$0 sm:$0xff]  ;;  %v211_v33 = vld [vmem:[%s567_s5 + $0x28] sm:$0xff]  ;;  %p418_p1 = scmp.lt.s32.totalorder %s303_s18, %s303_s18 }
   0xa   :  { %393 = vmatpush3.bf16.msra.mxu1 %v392_v13  ;;  %v404_v26 = vpack.c.bf16 %v209_v25, %v208_v23  ;;  %v210_v32 = vld [vmem:[%s567_s5 + $0x20] sm:$0xff]  ;;  %s413_s5 = scalar_lea.vmem %s303_s18, 128 }
   0xb   :  { %346 = vmatmul.mubr.msk.f32.vlgmr.msra.gmra.mrb[0].mxu0 %vm33_vm1, %v27_v16  ;;  %394 = vmatprep.subr.bf16.mxu1 %v437_v3  ;;  %v407_v34 = vpack.c.bf16 %v211_v33, %v210_v32  ;;  %v313_v35 = vld [vmem:[%s566_s4] ss:$0 sm:$0xff]  ;;  %p414_p0 = scmp.ne.s32.totalorder %s303_s18, %s413_s5  ;;  %p419_p2 = scmp.lt.s32.totalorder %s413_s5, %s413_s5 }
   0xc   :  { %379 = vmatprep.mubr.msk.f32.mxu0 %vm438_vm0, %v439_v6  ;;  %402 = vmatpush3.bf16.msra.mxu0 %v401_v24  ;;  %v315_v40 = vld [vmem:[%s568_s6] ss:$0 sm:$0xff] }
   0xd   :  { %403 = vmatprep.subr.bf16.mxu0 %v437_v3  ;;  %p420_p3 = por %p419_p2, %p418_p1 }
   0xe   :  { %396 = vmatpush3.bf16.msra.mxu1 %v395_v17 }
   0xf   :  { %397 = vmatprep.subr.bf16.mxu1 %v437_v3  ;;  %p421_p4 = pnand %p420_p3, %p414_p0 }
  0x10   :  { %405 = vmatpush3.bf16.msra.mxu0 %v404_v26 }
  0x11   :  { %406 = vmatprep.subr.bf16.mxu0 %v437_v3 }
  0x12   :  { %399 = vmatpush3.bf16.msra.mxu1 %v398_v20 }
  0x14   :  { %408 = vmatpush3.bf16.msra.mxu0 %v407_v34 }
  0xde   :  { %v103_v28 = vpop.f32.mrb[0].mxu0 }
  0xdf   :  { %v113_v29 = vadd.f32 %v311_v27, %v103_v28  ;;  %v347_v30 = vpop.f32.mrb[1].mxu0 }
  0xe1   :  { %v114_v31 = vmax.f32 %v113_v29, 0.0 }
  0xe3   :  { %365 = vmatmul.mubr.msk.f32.vlgmr.msra.gmra.mrb[0].mxu1 %vm124_vm2, %v114_v31 }
 0x1b6   :  { %v194_v36 = vpop.f32.mrb[0].mxu1 }
 0x1b7   :  { %v204_v37 = vadd.f32 %v313_v35, %v194_v36  ;;  %v366_v38 = vpop.f32.mrb[1].mxu1 }
 0x1b9   :  { %v205_v39 = vmax.f32 %v204_v37, 0.0 }
 0x1bb   :  { %380 = vmatmul.mubr.msk.f32.vlgmr.msra.gmra.mrb[2].mxu0 %vm213_vm3, %v205_v39 }
 0x28e   :  { %v283_v41 = vpop.f32.mrb[2].mxu0 }
 0x28f   :  { %v293_v42 = vadd.f32 %v315_v40, %v283_v41  ;;  %v381_v43 = vpop.f32.mrb[3].mxu0 }
 0x291   :  { %295 = vst.msk [vmem:[#allocation2] sm:$0xff] %vm294_vm4, %v293_v42 }
 0x292   :  { %424 = shalt.err (!%p421_p4)
}
 0x293   :  { %s425_s20 = scalar_lea.hbm %s569_s7, 128 }
 0x294   :  { %p426_p5 = scmp.ne.s32.totalorder %s569_s7, %s425_s20  ;;  %p429_p6 = scmp.lt.u32.totalorder %s425_s20, %s569_s7 }
 0x296   :  { %p431_p7 = pnand %p429_p6, %p426_p5 }
 0x298   :  { %434 = shalt.err (!%p431_p7)
}
 0x299   :  { %305 = dma.vmem_to_hbm [thread:$0]  %s303_s18, 128, %s569_s7, [#allocation3]  }
 0x29a   :  { %435 = dma.done.wait [#allocation3], 128  }
 0x29b   :  { %436 = vsyncadd [#allocation3], 4294967168 }
 0x29c   :  { %309 = vsyncpa [#allocation3], 1 }

</bundles_post_ra>
